<compile_context>
chip_gen: v7x
topology: tpu7x:2x2x1
jax: 0.10.0
libtpu: 0.0.40
codegen_flags: <defaults>
</compile_context>

<pallas_src>
import jax
import jax.numpy as jnp
from jax.experimental import pallas as pl
from jax.experimental.pallas import tpu as pltpu


def u5_kernel(xT_ref, beta_ref, aT_ref, b_ref, c_ref, d_ref, o_ref):
    # Per grid step:
    #   xT_ref:   (dim, TB)   batch on lanes (lane-dense)
    #   beta_ref: (dim, 1)
    #   aT_ref:   (width, dim)
    #   b_ref:    (width, 1)
    #   c_ref:    (width, 1)
    #   d_ref:    (1, 1)      SMEM scalar
    #   o_ref:    (1, TB)     lane-dense output slab
    u0 = jnp.sin(jnp.pi * (xT_ref[...] - beta_ref[...]))               # (dim, TB)   VPU
    s = jnp.dot(aT_ref[...], u0, preferred_element_type=jnp.float32)   # (width, TB) MXU
    h = jnp.tanh(s - b_ref[...])                                       # (width, TB) EUP
    # Final (width -> 1) projection as VPU multiply + cross-sublane reduce
    # (avoids a degenerate N=1 MXU matmul).
    o_ref[...] = jnp.sum(h * c_ref[...], axis=0, keepdims=True) - d_ref[0, 0]


def _const_spec(shape):
    """Spec for a loop-invariant parameter: constant index_map (stays resident
    in VMEM) and single-buffered when the installed BlockSpec supports it."""
    index_map = lambda i: (0,) * len(shape)
    try:
        return pl.BlockSpec(shape, index_map, pipeline_mode=pl.Buffered(1))
    except TypeError:  # older BlockSpec without pipeline_mode
        return pl.BlockSpec(shape, index_map)


def _choose_batch_tile(B, block_b):
    """Pick the batch tile TB (lane axis)."""
    # Tiny batches: one full block (block last-dim == array dim is always legal).
    if B <= block_b and B <= 512:
        return B
    # Larger batches: lane-aligned (multiple of 128) tiles, capped at ~B/2 so
    # the grid has >= 2 steps and v7x megacore can shard the batch axis.
    half = pl.cdiv(B, 2)
    tb = min(block_b, pl.cdiv(half, 128) * 128)
    return max(tb, 128)


def u5_forward(x, beta, a, b, c, d, *, block_b=16 * 1024):
    """x: (B, dim) f32. Returns (B, 1) f32 (matches torch broadcasting).

    block_b: max batch-tile width (sweepable; ~16384 keeps live VMEM ~20 MiB,
    safe on v7x's 64 MiB; v5e/v6e can go to ~32768 with a higher vmem limit).
    """
    B, dim = x.shape
    width = a.shape[1]

    # --- lane-dense (batch-on-lanes) layout --------------------------------
    xT = x.T                          # (dim, B); see trade-off note at top.
    aT = a.T                          # (width, dim)
    beta_col = beta.reshape(dim, 1)
    b_col = b.reshape(width, 1)
    c_col = c.reshape(width, 1)
    d2 = d.reshape(1, 1)

    # --- batch tiling (no explicit padding; Pallas masks the partial tail) --
    tb = _choose_batch_tile(B, block_b)
    grid = (pl.cdiv(B, tb),)

    out = pl.pallas_call(
        u5_kernel,
        out_shape=jax.ShapeDtypeStruct((1, B), jnp.float32),
        grid=grid,
        in_specs=[
            # x tiles march along the batch (lane) axis; partial last block OK.
            pl.BlockSpec((dim, tb), lambda i: (0, i)),
            # Loop-invariant parameters: resident in VMEM, single-buffered.
            _const_spec((dim, 1)),
            _const_spec((width, dim)),
            _const_spec((width, 1)),
            _const_spec((width, 1)),
            # Scalar bias d lives in SMEM (no padded VMEM tile / vector load).
            pl.BlockSpec(memory_space=pltpu.MemorySpace.SMEM),
        ],
        out_specs=pl.BlockSpec((1, tb), lambda i: (0, i)),
        compiler_params=pltpu.CompilerParams(
            dimension_semantics=("parallel",),      # shard batch across TCs (v7x)
            vmem_limit_bytes=64 * 1024 * 1024,      # above 16/32 MiB defaults
        ),
    )(xT, beta_col, aT, b_col, c_col, d2)

    # (1, B) -> (B, 1) is a layout-preserving (free) reshape.
    return out.reshape(B, 1)


def u5_reference(x, beta, a, b, c, d):
    u0 = jnp.sin(jnp.pi * (x - beta[None, :]))
    h = jnp.tanh(u0 @ a - b[None, :])
    return h @ c - d  # (B, 1)


if __name__ == "__main__":
    dim, width = 10, 80

    key = jax.random.PRNGKey(0)
    k_x, k_a, k_b, k_c, k_d, k_beta, k_x2, k_x3 = jax.random.split(key, 8)

    # Deterministic "randn"-style parameter init (shapes match U5.__init__).
    a = jax.random.normal(k_a, (dim, width), dtype=jnp.float32)
    b = jax.random.normal(k_b, (width,), dtype=jnp.float32)
    c = jax.random.normal(k_c, (width, 1), dtype=jnp.float32)
    d = jax.random.normal(k_d, (1,), dtype=jnp.float32)
    beta = jax.random.normal(k_beta, (dim,), dtype=jnp.float32)

    # Case 1: small batch -> single full-array block path.
    batch = 8
    x = jax.random.normal(k_x, (batch, dim), dtype=jnp.float32)
    out = jax.block_until_ready(u5_forward(x, beta, a, b, c, d))
    ref = u5_reference(x, beta, a, b, c, d)
    assert out.shape == (batch, 1), out.shape
    assert jnp.allclose(out, ref, atol=1e-4, rtol=1e-4)

    # Case 2: batch > tile with a ragged tail -> multi-step grid, no explicit
    # padding (partial final block masked on writeback).
    batch2 = 200
    x2 = jax.random.normal(k_x2, (batch2, dim), dtype=jnp.float32)
    out2 = jax.block_until_ready(u5_forward(x2, beta, a, b, c, d, block_b=128))
    ref2 = u5_reference(x2, beta, a, b, c, d)
    assert out2.shape == (batch2, 1), out2.shape
    assert jnp.allclose(out2, ref2, atol=1e-4, rtol=1e-4)

    # Case 3: default tiling path -> tile capped at ~B/2 so the grid has
    # >= 2 parallel steps (megacore coverage).
    batch3 = 2048
    x3 = jax.random.normal(k_x3, (batch3, dim), dtype=jnp.float32)
    out3 = jax.block_until_ready(u5_forward(x3, beta, a, b, c, d))
    ref3 = u5_reference(x3, beta, a, b, c, d)
    assert out3.shape == (batch3, 1), out3.shape
    assert jnp.allclose(out3, ref3, atol=1e-4, rtol=1e-4)

    print("KERNEL_OK")
</pallas_src>

<mosaic_0001>
module attributes {stable_mosaic.version = 11 : i64} {
  func.func @u5_kernel(%arg0: i32, %arg1: memref<10x8xf32, #tpu.memory_space<vmem>>, %arg2: memref<10x1xf32, #tpu.memory_space<vmem>>, %arg3: memref<80x10xf32, #tpu.memory_space<vmem>>, %arg4: memref<80x1xf32, #tpu.memory_space<vmem>>, %arg5: memref<80x1xf32, #tpu.memory_space<vmem>>, %arg6: memref<1x1xf32, #tpu.memory_space<smem>>, %arg7: memref<1x8xf32, #tpu.memory_space<vmem>>) attributes {dimension_semantics = [#tpu.dimension_semantics<parallel>], iteration_bounds = array<i64: 1>, scalar_prefetch = 0 : i64, scratch_operands = 0 : i64, tpu.core_type = #tpu.core_type<tc>, window_params = [{transform_indices = @transform_0, window_bounds = array<i64: 10, 8>}, {pipeline_mode = #tpu.pipeline_mode<synchronous>, transform_indices = @transform_1, window_bounds = array<i64: 10, 1>}, {pipeline_mode = #tpu.pipeline_mode<synchronous>, transform_indices = @transform_2, window_bounds = array<i64: 80, 10>}, {pipeline_mode = #tpu.pipeline_mode<synchronous>, transform_indices = @transform_3, window_bounds = array<i64: 80, 1>}, {pipeline_mode = #tpu.pipeline_mode<synchronous>, transform_indices = @transform_4, window_bounds = array<i64: 80, 1>}, {transform_indices = @transform_5, window_bounds = array<i64: 1, 1>}, {transform_indices = @transform_6, window_bounds = array<i64: 1, 8>}]} {
    %c0 = arith.constant 0 : index
    %c0_0 = arith.constant 0 : index
    %0 = vector.load %arg1[%c0, %c0_0] : memref<10x8xf32, #tpu.memory_space<vmem>>, vector<10x8xf32>
    %c0_1 = arith.constant 0 : index
    %c0_2 = arith.constant 0 : index
    %1 = vector.load %arg2[%c0_1, %c0_2] : memref<10x1xf32, #tpu.memory_space<vmem>>, vector<10x1xf32>
    %2 = vector.broadcast %1 : vector<10x1xf32> to vector<10x8xf32>
    %3 = arith.subf %0, %2 : vector<10x8xf32>
    %cst = arith.constant 3.14159274 : f32
    %4 = vector.broadcast %cst : f32 to vector<10x8xf32>
    %5 = arith.mulf %4, %3 : vector<10x8xf32>
    %6 = math.sin %5 : vector<10x8xf32>
    %c0_3 = arith.constant 0 : index
    %c0_4 = arith.constant 0 : index
    %7 = vector.load %arg3[%c0_3, %c0_4] : memref<80x10xf32, #tpu.memory_space<vmem>>, vector<80x10xf32>
    %cst_5 = arith.constant dense<0.000000e+00> : vector<80x8xf32>
    %8 = tpu.matmul %7, %6, %cst_5 {dimension_numbers = #tpu.dot_dimension_numbers<[1], [0], [0], [1], [0, 0, 1, 1], [], []>} : vector<80x10xf32>, vector<10x8xf32>, vector<80x8xf32> -> vector<80x8xf32>
    %c0_6 = arith.constant 0 : index
    %c0_7 = arith.constant 0 : index
    %9 = vector.load %arg4[%c0_6, %c0_7] : memref<80x1xf32, #tpu.memory_space<vmem>>, vector<80x1xf32>
    %10 = vector.broadcast %9 : vector<80x1xf32> to vector<80x8xf32>
    %11 = arith.subf %8, %10 : vector<80x8xf32>
    %12 = math.tanh %11 : vector<80x8xf32>
    %c0_8 = arith.constant 0 : index
    %c0_9 = arith.constant 0 : index
    %13 = vector.load %arg5[%c0_8, %c0_9] : memref<80x1xf32, #tpu.memory_space<vmem>>, vector<80x1xf32>
    %14 = vector.broadcast %13 : vector<80x1xf32> to vector<80x8xf32>
    %15 = arith.mulf %12, %14 : vector<80x8xf32>
    %cst_10 = arith.constant dense<0.000000e+00> : vector<8xf32>
    %16 = vector.multi_reduction <add>, %15, %cst_10 [0] : vector<80x8xf32> to vector<8xf32>
    %17 = vector.shape_cast %16 : vector<8xf32> to vector<1x8xf32>
    %c0_11 = arith.constant 0 : index
    %c0_12 = arith.constant 0 : index
    %18 = memref.load %arg6[%c0_11, %c0_12] : memref<1x1xf32, #tpu.memory_space<smem>>
    %19 = vector.broadcast %18 : f32 to vector<1x8xf32>
    %20 = arith.subf %17, %19 : vector<1x8xf32>
    %c0_13 = arith.constant 0 : index
    %c0_14 = arith.constant 0 : index
    %21 = vector.load %arg7[%c0_13, %c0_14] : memref<1x8xf32, #tpu.memory_space<vmem>>, vector<1x8xf32>
    tpu.vector_store %arg7[%c0_13, %c0_14], %20 {strides = array<i32>} : memref<1x8xf32, #tpu.memory_space<vmem>>, vector<1x8xf32>,
    return
  }
  func.func @transform_0(%arg0: i32) -> (i32, i32) {
    %c0_i32 = arith.constant 0 : i32
    %c0_i32_0 = arith.constant 0 : i32
    return %c0_i32, %arg0 : i32, i32
  }
  func.func @transform_1(%arg0: i32) -> (i32, i32) {
    %c0_i32 = arith.constant 0 : i32
    %c0_i32_0 = arith.constant 0 : i32
    %c0_i32_1 = arith.constant 0 : i32
    return %c0_i32, %c0_i32_0 : i32, i32
  }
  func.func @transform_2(%arg0: i32) -> (i32, i32) {
    %c0_i32 = arith.constant 0 : i32
    %c0_i32_0 = arith.constant 0 : i32
    %c0_i32_1 = arith.constant 0 : i32
    return %c0_i32, %c0_i32_0 : i32, i32
  }
  func.func @transform_3(%arg0: i32) -> (i32, i32) {
    %c0_i32 = arith.constant 0 : i32
    %c0_i32_0 = arith.constant 0 : i32
    %c0_i32_1 = arith.constant 0 : i32
    return %c0_i32, %c0_i32_0 : i32, i32
  }
  func.func @transform_4(%arg0: i32) -> (i32, i32) {
    %c0_i32 = arith.constant 0 : i32
    %c0_i32_0 = arith.constant 0 : i32
    %c0_i32_1 = arith.constant 0 : i32
    return %c0_i32, %c0_i32_0 : i32, i32
  }
  func.func @transform_5(%arg0: i32) -> (i32, i32) {
    %c0_i32 = arith.constant 0 : i32
    %c0_i32_0 = arith.constant 0 : i32
    %c0_i32_1 = arith.constant 0 : i32
    return %c0_i32, %c0_i32_0 : i32, i32
  }
  func.func @transform_6(%arg0: i32) -> (i32, i32) {
    %c0_i32 = arith.constant 0 : i32
    %c0_i32_0 = arith.constant 0 : i32
    return %c0_i32, %arg0 : i32, i32
  }
}

</mosaic_0001>

<bundles_post_ra>
// kernel: tpu_custom_call.1
= control target key start
LH: loop header
LB: loop body
LE: loop exit
PB: predicated region body
PF: predicated region fallthrough
CT: control target
= control target key end

     0   :  { %12 = vsyncpa [#allocation4], 0  ;;  %s1181_s0 = inlined_call_operand.hbm [shape: f32[10,8], index: 0, kind: input, shape index: {}]   ;;  %s1182_s1 = inlined_call_operand.hbm [shape: f32[10,1], index: 1, kind: input, shape index: {}]   ;;  %s1183_s2 = inlined_call_operand.hbm [shape: f32[80,10], index: 2, kind: input, shape index: {}]   ;;  %s1184_s3 = inlined_call_operand.hbm [shape: f32[80,1], index: 3, kind: input, shape index: {}]   ;;  %s1185_s4 = inlined_call_operand.hbm [shape: f32[80,1], index: 4, kind: input, shape index: {}]   ;;  %s1186_s5 = inlined_call_operand.<no memory space> [shape: f32[1,1], index: 5, kind: input, shape index: {}]   ;;  %s1187_s6 = inlined_call_operand.hbm [shape: f32[1,8], index: 6, kind: output, shape index: {}]  }
   0x1   :  { %13 = vsyncpa [#allocation7], 0 }
   0x2   :  { %14 = vsyncpa [#allocation10], 0 }
   0x3   :  { %15 = vsyncpa [#allocation5], 0  ;;  %s929_s21 = smov [#allocation6]   ;;  %s930_s23 = smov [#allocation9]  }
   0x4   :  { %s33_s22 = sshll.u32 %s929_s21, 4  ;;  %s57_s24 = sshll.u32 %s930_s23, 4  ;;  %s34_s22 = int_to_ptr.vmem [resolvable:$true] %s33_s22  ;;  %s980_s24 = int_to_ptr.vmem [resolvable:$true] %s57_s24 }
   0x5   :  { %s789_s27 = scalar_lea.hbm %s1182_s1, 256 }
   0x6   :  { %p790_p0 = scmp.ne.s32.totalorder %s1182_s1, %s789_s27  ;;  %p793_p1 = scmp.lt.u32.totalorder %s789_s27, %s1182_s1 }
   0x8   :  { %p795_p2 = pnand %p793_p1, %p790_p0 }
   0xa   :  { %798 = shalt.err (!%p795_p2)
}
   0xb   :  { %s799_s8 = scalar_lea.vmem %s34_s22, 256  ;;  %p804_p4 = scmp.lt.s32.totalorder %s34_s22, %s34_s22 }
   0xc   :  { %p800_p3 = scmp.ne.s32.totalorder %s34_s22, %s799_s8  ;;  %p805_p5 = scmp.lt.s32.totalorder %s799_s8, %s799_s8 }
   0xe   :  { %p806_p6 = por %p805_p5, %p804_p4 }
  0x10   :  { %p807_p7 = pnand %p806_p6, %p800_p3 }
  0x12   :  { %810 = shalt.err (!%p807_p7)
}
  0x13   :  { %s931_s9 = smov 128   ;;  %s932_s10 = smov 8  }
  0x14   :  { %39 = dma.hbm_to_vmem [thread:$0]  %s1182_s1, 256, %s34_s22, [#allocation7], %s931_s9, %s931_s9, %s932_s10  }
  0x15   :  { %s811_s15 = scalar_lea.hbm %s1184_s3, 1280 }
  0x16   :  { %p812_p8 = scmp.ne.s32.totalorder %s1184_s3, %s811_s15  ;;  %p815_p9 = scmp.lt.u32.totalorder %s811_s15, %s1184_s3 }
  0x18   :  { %p817_p10 = pnand %p815_p9, %p812_p8 }
  0x1a   :  { %820 = shalt.err (!%p817_p10)
}
  0x1b   :  { %s821_s20 = scalar_lea.vmem %s980_s24, 1280  ;;  %p826_p12 = scmp.lt.s32.totalorder %s980_s24, %s980_s24 }
  0x1c   :  { %p822_p11 = scmp.ne.s32.totalorder %s980_s24, %s821_s20  ;;  %p827_p13 = scmp.lt.s32.totalorder %s821_s20, %s821_s20 }
  0x1e   :  { %p828_p0 = por %p827_p13, %p826_p12 }
  0x20   :  { %p829_p1 = pnand %p828_p0, %p822_p11 }
  0x22   :  { %832 = shalt.err (!%p829_p1)
}
  0x23   :  { %63 = dma.hbm_to_vmem [thread:$0]  %s1184_s3, 1280, %s980_s24, [#allocation10], %s931_s9, %s931_s9, %s932_s10  }
  0x24   :  { %s933_s22 = smov [#allocation3]   ;;  %s934_s25 = smov [#allocation8]  }
  0x25   :  { %s21_s23 = sshll.u32 %s933_s22, 4  ;;  %s45_s26 = sshll.u32 %s934_s25, 4  ;;  %s22_s23 = int_to_ptr.vmem [resolvable:$true] %s21_s23  ;;  %s1017_s26 = int_to_ptr.vmem [resolvable:$true] %s45_s26 }
  0x26   :  { %s833_s29 = scalar_lea.hbm %s1181_s0, 256 }
  0x27   :  { %p834_p2 = scmp.ne.s32.totalorder %s1181_s0, %s833_s29  ;;  %p837_p3 = scmp.lt.u32.totalorder %s833_s29, %s1181_s0 }
  0x29   :  { %p839_p4 = pnand %p837_p3, %p834_p2 }
  0x2b   :  { %842 = shalt.err (!%p839_p4)
}
  0x2c   :  { %s843_s3 = scalar_lea.vmem %s22_s23, 256  ;;  %p848_p6 = scmp.lt.s32.totalorder %s22_s23, %s22_s23 }
  0x2d   :  { %p844_p5 = scmp.ne.s32.totalorder %s22_s23, %s843_s3  ;;  %p849_p7 = scmp.lt.s32.totalorder %s843_s3, %s843_s3 }
  0x2f   :  { %p850_p8 = por %p849_p7, %p848_p6 }
  0x31   :  { %p851_p9 = pnand %p850_p8, %p844_p5 }
  0x33   :  { %854 = shalt.err (!%p851_p9)
}
  0x34   :  { %27 = dma.hbm_to_vmem [thread:$0]  %s1181_s0, 256, %s22_s23, [#allocation4], %s931_s9, %s931_s9, %s932_s10  }
  0x35   :  { %s855_s15 = scalar_lea.hbm %s1183_s2, 1280 }
  0x36   :  { %p856_p10 = scmp.ne.s32.totalorder %s1183_s2, %s855_s15  ;;  %p859_p11 = scmp.lt.u32.totalorder %s855_s15, %s1183_s2 }
  0x38   :  { %p861_p12 = pnand %p859_p11, %p856_p10 }
  0x3a   :  { %864 = shalt.err (!%p861_p12)
}
  0x3b   :  { %s865_s20 = scalar_lea.vmem %s1017_s26, 1280  ;;  %p870_p0 = scmp.lt.s32.totalorder %s1017_s26, %s1017_s26 }
  0x3c   :  { %p866_p13 = scmp.ne.s32.totalorder %s1017_s26, %s865_s20  ;;  %p871_p1 = scmp.lt.s32.totalorder %s865_s20, %s865_s20 }
  0x3e   :  { %p872_p2 = por %p871_p1, %p870_p0 }
  0x40   :  { %p873_p3 = pnand %p872_p2, %p866_p13 }
  0x42   :  { %876 = shalt.err (!%p873_p3)
}
  0x43   :  { %51 = dma.hbm_to_vmem [thread:$0]  %s1183_s2, 1280, %s1017_s26, [#allocation7], %s931_s9, %s931_s9, %s932_s10  }
  0x44   :  { %s935_s21 = smov [#allocation11]   ;;  %s877_s27 = scalar_lea.hbm %s1185_s4, 1280 }
  0x45   :  { %s69_s22 = sshll.u32 %s935_s21, 4  ;;  %p878_p4 = scmp.ne.s32.totalorder %s1185_s4, %s877_s27  ;;  %s70_s22 = int_to_ptr.vmem [resolvable:$true] %s69_s22 }
  0x46   :  { %p881_p5 = scmp.lt.u32.totalorder %s877_s27, %s1185_s4 }
  0x48   :  { %p883_p6 = pnand %p881_p5, %p878_p4 }
  0x4a   :  { %886 = shalt.err (!%p883_p6)
}
  0x4b   :  { %s887_s8 = scalar_lea.vmem %s70_s22, 1280  ;;  %p892_p8 = scmp.lt.s32.totalorder %s70_s22, %s70_s22 }
  0x4c   :  { %p888_p7 = scmp.ne.s32.totalorder %s70_s22, %s887_s8  ;;  %p893_p9 = scmp.lt.s32.totalorder %s887_s8, %s887_s8 }
  0x4e   :  { %p894_p10 = por %p893_p9, %p892_p8 }
  0x50   :  { %p895_p11 = pnand %p894_p10, %p888_p7 }
  0x52   :  { %898 = shalt.err (!%p895_p11)
}
  0x53   :  { %75 = dma.hbm_to_vmem [thread:$0]  %s1185_s4, 1280, %s70_s22, [#allocation10], %s931_s9, %s931_s9, %s932_s10  }
  0x54   :  { %921 = dma.done.wait [#allocation4], 256  }
  0x55   :  { %922 = vsyncadd [#allocation4], 4294967040 }
  0x56   :  { %923 = dma.done.wait [#allocation7], 1536  }
  0x57   :  { %924 = vsyncadd [#allocation7], 4294965760 }
  0x58   :  { %925 = dma.done.wait [#allocation10], 2560  }
  0x59   :  { %926 = vsyncadd [#allocation10], 4294964736  ;;  %v936_v0 = vmov 0   ;;  %v95_v1 = vld [vmem:[#allocation6] sm:$0xff]  ;;  %v96_v2 = vld [vmem:[#allocation6 + $0x8] sm:$0x3] }
  0x5a   :  { %759 = vset.pattern.permute.xlu0 %v936_v0  ;;  %760 = vset.pattern.permute.xlu1 %v936_v0  ;;  %v481_v3 = vld [vmem:[#allocation9 + $0x10] sm:$0xff]  ;;  %v483_v4 = vld [vmem:[#allocation9 + $0x20] sm:$0xff]  ;;  %v488_v8 = vld [vmem:[#allocation9 + $0x48] sm:$0xff]  ;;  %vm329_vm0 = vcmask 80896   ;;  %v937_v47 = vmov 683565275  }
  0x5b   :  { %99 = vperm.xlu0 %759, %v95_v1   ;;  %v485_v5 = vld [vmem:[#allocation9 + $0x30] sm:$0xff]  ;;  %v487_v7 = vld [vmem:[#allocation9 + $0x40] sm:$0xff]  ;;  %v480_v15 = vld [vmem:[#allocation9 + $0x8] sm:$0xff]  ;;  %v938_v51 = vmov 2475754826   ;;  %s944_s10 = smov [#allocation12]  }
  0x5c   :  { %v559_v6 = vld [vmem:[#allocation11] sm:$0xff]  ;;  %v565_v10 = vld [vmem:[#allocation11 + $0x30] sm:$0xff]  ;;  %v482_v16 = vld [vmem:[#allocation9 + $0x18] sm:$0xff]  ;;  %v939_v53 = vmov 2131351028   ;;  %s666_s11 = sshll.u32 %s944_s10, 4  ;;  %s667_s11 = int_to_ptr.vmem [resolvable:$true] %s666_s11 }
  0x5d   :  { %v563_v9 = vld [vmem:[#allocation11 + $0x20] sm:$0xff]  ;;  %v325_v13 = vld [vmem:[#allocation8 + $0x30] sm:$0xff]  ;;  %v484_v17 = vld [vmem:[#allocation9 + $0x28] sm:$0xff]  ;;  %v940_v55 = vmov 2102212464   ;;  %s899_s3 = scalar_lea.vmem %s667_s11, 16  ;;  %p904_p13 = scmp.lt.s32.totalorder %s667_s11, %s667_s11 }
  0x5e   :  { %v567_v11 = vld [vmem:[#allocation11 + $0x40] sm:$0xff]  ;;  %721 = vmatprep.mubr.msk.f32.mxu1 %vm329_vm0, %v325_v13  ;;  %v479_v14 = vld [vmem:[#allocation9] sm:$0xff]  ;;  %v486_v19 = vld [vmem:[#allocation9 + $0x38] sm:$0xff]  ;;  %v941_v57 = vmov 920167782   ;;  %p900_p12 = scmp.ne.s32.totalorder %s667_s11, %s899_s3  ;;  %s903_s24 = scalar_lea.vmem %s667_s11, 32 }
  0x5f   :  { %104 = vperm.xlu0 %759, %v96_v2   ;;  %v319_v12 = vld [vmem:[#allocation8] sm:$0xff]  ;;  %491 = vperm.xlu1 %760, %v479_v14   ;;  %v94_v22 = vld [vmem:[#allocation3 + $0x8] sm:$0x3]  ;;  %v561_v29 = vld [vmem:[#allocation11 + $0x10] sm:$0xff]  ;;  %v942_v1 = vmov 1326507024   ;;  %p905_p0 = scmp.lt.s32.totalorder %s903_s24, %s899_s3 }
  0x60   :  { %712 = vmatprep.mubr.msk.f32.mxu0 %vm329_vm0, %v319_v12  ;;  %v93_v18 = vld [vmem:[#allocation3] sm:$0xff]  ;;  %v560_v23 = vld [vmem:[#allocation11 + $0x8] sm:$0xff]  ;;  %v562_v35 = vld [vmem:[#allocation11 + $0x18] sm:$0xff] }
  0x61   :  { %v564_v42 = vld [vmem:[#allocation11 + $0x28] sm:$0xff]  ;;  %v566_v59 = vld [vmem:[#allocation11 + $0x38] sm:$0xff]  ;;  %p906_p1 = por %p905_p0, %p904_p13 }
  0x63   :  { %501 = vperm.xlu0 %759, %v481_v3   ;;  %496 = vperm.xlu1 %760, %v480_v15   ;;  %p907_p2 = pnand %p906_p1, %p900_p12 }
  0x67   :  { %511 = vperm.xlu0 %759, %v483_v4   ;;  %506 = vperm.xlu1 %760, %v482_v16  }
  0x6b   :  { %521 = vperm.xlu0 %759, %v485_v5   ;;  %516 = vperm.xlu1 %760, %v484_v17  }
  0x6f   :  { %571 = vperm.xlu0 %759, %v559_v6   ;;  %526 = vperm.xlu1 %760, %v486_v19  }
  0x73   :  { %531 = vperm.xlu0 %759, %v487_v7   ;;  %576 = vperm.xlu1 %760, %v560_v23  }
  0x77   :  { %536 = vperm.xlu0 %759, %v488_v8   ;;  %581 = vperm.xlu1 %760, %v561_v29  }
  0x7b   :  { %591 = vperm.xlu0 %759, %v563_v9   ;;  %586 = vperm.xlu1 %760, %v562_v35   ;;  %v568_v9 = vld [vmem:[#allocation11 + $0x48] sm:$0xff] }
  0x7f   :  { %601 = vperm.xlu0 %759, %v565_v10   ;;  %596 = vperm.xlu1 %760, %v564_v42  }
  0x83   :  { %611 = vperm.xlu0 %759, %v567_v11   ;;  %606 = vperm.xlu1 %760, %v566_v59  }
  0x87   :  { %616 = vperm.xlu1 %760, %v568_v9  }
  0xda   :  { %v100_v20 = vpop.permute.xlu0 %99 }
  0xdb   :  { %v107_v21 = vsub.f32 %v93_v18, %v100_v20 }
  0xdd   :  { %v1071_v24 = vmul.f32 3.1415927, %v107_v21 }
  0xde   :  { %v105_v25 = vpop.permute.xlu0 %104 }
  0xdf   :  { %v111_v26 = vand.u32 2147483647, %v1071_v24  ;;  %v114_v27 = vand.u32 2139095040, %v1071_v24  ;;  %v108_v28 = vsub.f32 %v94_v22, %v105_v25  ;;  %vm113_vm15 = vcmp.lt.s32.totalorder %v1071_v24, 0 }
  0xe1   :  { %v115_v30 = vshrl.u32 %v114_v27, 23  ;;  %v118_v31 = vand.u32 8388607, %v111_v26  ;;  %v1077_v32 = vmul.f32 3.1415927, %v108_v28 }
  0xe3   :  { %v677_v33 = vadd.s32 4294967169, %v115_v30  ;;  %v218_v34 = vand.u32 2139095040, %v1077_v32  ;;  %v119_v37 = vor.u32 8388608, %v118_v31  ;;  %v215_v39 = vand.u32 2147483647, %v1077_v32 }
  0xe5   :  { %v121_v36 = vadd.s32 1, %v677_v33  ;;  %v219_v38 = vshrl.u32 %v218_v34, 23  ;;  %v1081_v45 = vshll.u32 %v119_v37, 8  ;;  %v222_v49 = vand.u32 8388607, %v215_v39 }
  0xe7   :  { %vm122_vm1 = vcmp.gt.s32.totalorder %v121_v36, 0  ;;  %v681_v41 = vadd.s32 4294967169, %v219_v38  ;;  %v223_v17 = vor.u32 8388608, %v222_v49 }
  0xe8   :  { %v123_v40 = vsel %vm122_vm1, %v121_v36, 0  ;;  %vm1129_vm1 = vcmp.le.f32.partialorder %v111_v26, 0.7853982 }
  0xe9   :  { %v124_v43 = vshrl.u32 %v123_v40, 5  ;;  %v125_v44 = vand.u32 31, %v123_v40  ;;  %v225_v50 = vadd.s32 1, %v681_v41  ;;  %v263_v33 = vshll.u32 %v223_v17, 8 }
  0xeb   :  { %v126_v46 = vsub.s32 32, %v125_v44  ;;  %v128_v48 = vshll.u32 %v937_v47, %v125_v44  ;;  %v131_v52 = vshll.u32 %v938_v51, %v125_v44  ;;  %v134_v54 = vshll.u32 %v939_v53, %v125_v44 }
  0xec   :  { %v137_v56 = vshll.u32 %v940_v55, %v125_v44  ;;  %v140_v58 = vshll.u32 %v941_v57, %v125_v44  ;;  %vm143_vm2 = vcmp.lt.s32.totalorder %v124_v43, 1  ;;  %vm145_vm3 = vcmp.lt.s32.totalorder %v124_v43, 3 }
  0xed   :  { %v129_v60 = vshrl.u32 %v938_v51, %v126_v46  ;;  %v132_v61 = vshrl.u32 %v939_v53, %v126_v46  ;;  %v135_v62 = vshrl.u32 %v940_v55, %v126_v46  ;;  %v127_v63 = vshrl.u32 %v937_v47, %v126_v46 }
  0xee   :  { %v138_v0 = vshrl.u32 %v941_v57, %v126_v46  ;;  %v141_v2 = vshrl.u32 %v942_v1, %v126_v46  ;;  %vm226_vm4 = vcmp.gt.s32.totalorder %v225_v50, 0  ;;  %vm146_vm5 = vcmp.lt.s32.totalorder %v124_v43, 4 }
  0xef   :  { %v130_v3 = vor.u32 %v129_v60, %v128_v48  ;;  %v133_v4 = vor.u32 %v132_v61, %v131_v52  ;;  %v136_v5 = vor.u32 %v135_v62, %v134_v54  ;;  %v227_v8 = vsel %vm226_vm4, %v225_v50, 0 }
  0xf0   :  { %v139_v6 = vor.u32 %v138_v0, %v137_v56  ;;  %v142_v7 = vor.u32 %v141_v2, %v140_v58  ;;  %vm144_vm6 = vcmp.lt.s32.totalorder %v124_v43, 2  ;;  %v229_v20 = vand.u32 31, %v227_v8 }
  0xf1   :  { %v147_v10 = vsel %vm143_vm2, %v127_v63, %v130_v3  ;;  %v148_v11 = vsel %vm146_vm5, %v136_v5, 2102212464  ;;  %v151_v12 = vsel %vm143_vm2, %v130_v3, %v133_v4  ;;  %v155_v13 = vsel %vm143_vm2, %v133_v4, %v136_v5 }
  0xf2   :  { %v149_v14 = vsel %vm145_vm3, %v133_v4, %v148_v11  ;;  %v152_v15 = vsel %vm146_vm5, %v139_v6, 920167782  ;;  %v156_v16 = vsel %vm146_vm5, %v142_v7, 1326507024  ;;  %v228_v30 = vshrl.u32 %v227_v8, 5 }
  0xf3   :  { %v153_v18 = vsel %vm145_vm3, %v136_v5, %v152_v15  ;;  %v157_v19 = vsel %vm145_vm3, %v139_v6, %v156_v16  ;;  %v150_v21 = vsel %vm144_vm6, %v147_v10, %v149_v14  ;;  %v230_v31 = vsub.s32 32, %v229_v20 }
  0xf4   :  { %v154_v22 = vsel %vm144_vm6, %v151_v12, %v153_v18  ;;  %v158_v23 = vsel %vm144_vm6, %v155_v13, %v157_v19  ;;  %v166_v34 = vmul.u32 %v1081_v45, %v150_v21  ;;  %v232_v35 = vshll.u32 %v937_v47, %v229_v20 }
  0xf5   :  { %v1094_v25 = vmul.u32.u64.low %v1081_v45, %v158_v23  ;;  %v1095_v27 = vmul.u32.u64.high %v1081_v45, %v158_v23, %v1094_v25  ;;  %v1098_v28 = vmul.u32.u64.low %v1081_v45, %v154_v22  ;;  %v1099_v29 = vmul.u32.u64.high %v1081_v45, %v154_v22, %v1098_v28 }
  0xf6   :  { %v235_v36 = vshll.u32 %v938_v51, %v229_v20  ;;  %v238_v37 = vshll.u32 %v939_v53, %v229_v20  ;;  %v233_v38 = vshrl.u32 %v938_v51, %v230_v31  ;;  %v236_v40 = vshrl.u32 %v939_v53, %v230_v31 }
  0xf7   :  { %v239_v41 = vshrl.u32 %v940_v55, %v230_v31  ;;  %v241_v42 = vshll.u32 %v940_v55, %v229_v20  ;;  %vm168_vm7 = vc.u32 %v1095_v27, %v1098_v28  ;;  %v169_v43 = vadd.s32 1, %v1099_v29 }
  0xf8   :  { %v242_v44 = vshrl.u32 %v941_v57, %v230_v31  ;;  %v244_v46 = vshll.u32 %v941_v57, %v229_v20  ;;  %v234_v48 = vor.u32 %v233_v38, %v232_v35  ;;  %v237_v49 = vor.u32 %v236_v40, %v235_v36 }
  0xf9   :  { %v240_v50 = vor.u32 %v239_v41, %v238_v37  ;;  %v245_v52 = vshrl.u32 %v942_v1, %v230_v31  ;;  %v170_v45 = vsel %vm168_vm7, %v169_v43, %v1099_v29  ;;  %vm247_vm8 = vcmp.lt.s32.totalorder %v228_v30, 1 }
  0xfa   :  { %v243_v54 = vor.u32 %v242_v44, %v241_v42  ;;  %vm250_vm9 = vcmp.lt.s32.totalorder %v228_v30, 4  ;;  %v171_v51 = vadd.s32 %v170_v45, %v166_v34  ;;  %vm249_vm10 = vcmp.lt.s32.totalorder %v228_v30, 3 }
  0xfb   :  { %v246_v53 = vor.u32 %v245_v52, %v244_v46  ;;  %v252_v55 = vsel %vm250_vm9, %v240_v50, 2102212464  ;;  %v231_v56 = vshrl.u32 %v937_v47, %v230_v31  ;;  %v255_v58 = vsel %vm247_vm8, %v234_v48, %v237_v49 }
  0xfc   :  { %v256_v59 = vsel %vm250_vm9, %v243_v54, 920167782  ;;  %v259_v60 = vsel %vm247_vm8, %v237_v49, %v240_v50  ;;  %v172_v61 = vadd.s32 536870912, %v171_v51  ;;  %vm248_vm11 = vcmp.lt.s32.totalorder %v228_v30, 2 }
  0xfd   :  { %v257_v57 = vsel %vm249_vm10, %v240_v50, %v256_v59  ;;  %v260_v62 = vsel %vm250_vm9, %v246_v53, 1326507024  ;;  %v251_v63 = vsel %vm247_vm8, %v231_v56, %v234_v48  ;;  %v253_v0 = vsel %vm249_vm10, %v237_v49, %v252_v55 }
  0xfe   :  { %v258_v1 = vsel %vm248_vm11, %v255_v58, %v257_v57  ;;  %v261_v2 = vsel %vm249_vm10, %v243_v54, %v260_v62  ;;  %v1109_v3 = vshrl.u32 %v172_v61, 30  ;;  %v254_v9 = vsel %vm248_vm11, %v251_v63, %v253_v0 }
  0xff   :  { %v262_v4 = vsel %vm248_vm11, %v259_v60, %v261_v2  ;;  %v1111_v5 = vmul.u32.u64.low %v263_v33, %v258_v1  ;;  %v1112_v6 = vmul.u32.u64.high %v263_v33, %v258_v1, %v1111_v5  ;;  %v270_v12 = vmul.u32 %v263_v33, %v254_v9 }
 0x100   :  { %v1114_v7 = vmul.u32.u64.low %v263_v33, %v262_v4  ;;  %v1115_v8 = vmul.u32.u64.high %v263_v33, %v262_v4, %v1114_v7  ;;  %v174_v47 = vshll.u32 %v1109_v3, 30  ;;  %v167_v25 = vadd.s32 %v1098_v28, %v1095_v27 }
 0x101   :  { %v273_v11 = vadd.s32 1, %v1112_v6  ;;  %v197_v60 = vsub.s32 4, %v1109_v3  ;;  %vm217_vm2 = vcmp.lt.s32.totalorder %v1077_v32, 0  ;;  %vm216_vm3 = vcmp.le.f32.partialorder %v215_v39, 0.7853982 }
 0x102   :  { %v175_v10 = vsub.s32 %v171_v51, %v174_v47  ;;  %vm272_vm12 = vc.u32 %v1115_v8, %v1111_v5  ;;  %v271_v49 = vadd.s32 %v1111_v5, %v1115_v8  ;;  %vm360_vm8 = vcmask 1041408  }
 0x103   :  { %v274_v14 = vsel %vm272_vm12, %v273_v11, %v1112_v6  ;;  %v198_v26 = vsel %vm113_vm15, %v197_v60, %v1109_v3  ;;  %vm203_vm11 = vweird.f32 %v1071_v24  ;;  %vm307_vm12 = vweird.f32 %v1077_v32 }
 0x104   :  { %v177_v13 = vsub.s32 0, %v175_v10  ;;  %v275_v15 = vadd.s32 %v274_v14, %v270_v12  ;;  %v200_v1 = vsel %vm1129_vm1, 0, %v198_v26 }
 0x105   :  { %v204_v7 = vadd.s32 3, %v200_v1 }
 0x106   :  { %v678_v16 = vmin.u32 %v177_v13, %v175_v10  ;;  %v276_v17 = vadd.s32 536870912, %v275_v15 }
 0x107   :  { %v205_v9 = vand.u32 3, %v204_v7 }
 0x108   :  { %v179_v18 = vclz %v678_v16  ;;  %v277_v19 = vshrl.u32 %v276_v17, 30 }
 0x109   :  { %vm207_vm4 = vcmp.eq.s32.totalorder %v205_v9, 0  ;;  %vm210_vm5 = vcmp.eq.s32.totalorder %v205_v9, 2  ;;  %vm206_vm6 = vcmp.lt.s32.totalorder %v205_v9, 2 }
 0x10a   :  { %v679_v20 = vadd.s32 4294967294, %v179_v18  ;;  %v278_v21 = vshll.u32 %v277_v19, 30  ;;  %v301_v63 = vsub.s32 4, %v277_v19 }
 0x10c   :  { %vm680_vm13 = vcmp.lt.s32.totalorder %v679_v20, 0  ;;  %v279_v23 = vsub.s32 %v275_v15, %v278_v21  ;;  %v302_v4 = vsel %vm217_vm2, %v301_v63, %v277_v19 }
 0x10d   :  { %v182_v22 = vsel %vm680_vm13, 0, %v679_v20  ;;  %v304_v6 = vsel %vm216_vm3, 0, %v302_v4  ;;  %vm943_vm13 = vmmov 1  }
 0x10e   :  { %v183_v29 = vsub.s32 32, %v182_v22  ;;  %v187_v30 = vsub.s32 4294967266, %v182_v22  ;;  %v281_v31 = vsub.s32 0, %v279_v23  ;;  %v184_v33 = vshll.u32 %v175_v10, %v182_v22 }
 0x10f   :  { %v308_v3 = vadd.s32 3, %v304_v6 }
 0x110   :  { %v185_v34 = vshrl.u32 %v167_v25, %v183_v29  ;;  %v188_v35 = vadd.s32 127, %v187_v30  ;;  %v682_v36 = vmin.u32 %v281_v31, %v279_v23  ;;  %v320_v29 = vld [vmem:[#allocation8 + $0x8] sm:$0xff]  ;;  %v326_v30 = vld [vmem:[#allocation8 + $0x38] sm:$0xff]  ;;  %v321_v31 = vld [vmem:[#allocation8 + $0x10] sm:$0xff] }
 0x111   :  { %v309_v12 = vand.u32 3, %v308_v3 }
 0x112   :  { %v186_v37 = vor.u32 %v185_v34, %v184_v33  ;;  %v189_v38 = vshll.u32 %v188_v35, 23  ;;  %v283_v40 = vclz %v682_v36  ;;  %v327_v33 = vld [vmem:[#allocation8 + $0x40] sm:$0xff]  ;;  %v324_v35 = vld [vmem:[#allocation8 + $0x28] sm:$0xff]  ;;  %v492_v36 = vpop.permute.xlu1 %491 }
 0x113   :  { %vm314_vm7 = vcmp.eq.s32.totalorder %v309_v12, 2  ;;  %vm311_vm9 = vcmp.eq.s32.totalorder %v309_v12, 0  ;;  %vm310_vm10 = vcmp.lt.s32.totalorder %v309_v12, 2  ;;  %v323_v34 = vld [vmem:[#allocation8 + $0x20] sm:$0xff] }
 0x114   :  { %v190_v41 = vor.u32 4788187, %v189_v38  ;;  %v683_v42 = vadd.s32 4294967294, %v283_v40  ;;  %v193_v44 = vcvt.s32.f32 %v186_v37  ;;  %v502_v38 = vpop.permute.xlu0 %501 }
 0x116   :  { %v191_v43 = vand.u32 2147483647, %v190_v41  ;;  %vm684_vm14 = vcmp.lt.s32.totalorder %v683_v42, 0  ;;  %v497_v37 = vpop.permute.xlu1 %496 }
 0x117   :  { %v286_v48 = vsel %vm684_vm14, 0, %v683_v42  ;;  %vm728_vm14 = vmpackc.low %vm360_vm8, %vm943_vm13 }
 0x118   :  { %v194_v46 = vmul.f32 %v193_v44, %v191_v43  ;;  %v287_v27 = vsub.s32 32, %v286_v48  ;;  %v291_v28 = vsub.s32 4294967266, %v286_v48  ;;  %v288_v52 = vshll.u32 %v279_v23, %v286_v48  ;;  %v512_v41 = vpop.permute.xlu0 %511 }
 0x11a   :  { %v195_v50 = vxor.u32 2147483648, %v194_v46  ;;  %v289_v45 = vshrl.u32 %v271_v49, %v287_v27  ;;  %v292_v54 = vadd.s32 127, %v291_v28  ;;  %v507_v40 = vpop.permute.xlu1 %506 }
 0x11c   :  { %v196_v51 = vsel %vm113_vm15, %v195_v50, %v194_v46  ;;  %v290_v55 = vor.u32 %v289_v45, %v288_v52  ;;  %v293_v56 = vshll.u32 %v292_v54, 23  ;;  %v522_v43 = vpop.permute.xlu0 %521  ;;  %vm658_vm15 = vcmask 57344  }
 0x11d   :  { %v199_v58 = vsel %vm1129_vm1, %v1071_v24, %v196_v51  ;;  %v322_v24 = vld [vmem:[#allocation8 + $0x18] sm:$0xff] }
 0x11e   :  { %v294_v59 = vor.u32 4788187, %v293_v56  ;;  %761 = vcosq.f32 %v199_v58  ;;  %v297_v57 = vcvt.s32.f32 %v290_v55  ;;  %v517_v42 = vpop.permute.xlu1 %516 }
 0x11f   :  { %763 = vsinq.f32 %v199_v58 }
 0x120   :  { %v295_v61 = vand.u32 2147483647, %v294_v59  ;;  %v572_v46 = vpop.permute.xlu0 %571 }
 0x122   :  { %v298_v62 = vmul.f32 %v297_v57, %v295_v61  ;;  %v527_v44 = vpop.permute.xlu1 %526 }
 0x124   :  { %v299_v0 = vxor.u32 2147483648, %v298_v62  ;;  %v532_v54 = vpop.permute.xlu0 %531 }
 0x126   :  { %v300_v2 = vsel %vm217_vm2, %v299_v0, %v298_v62  ;;  %v577_v48 = vpop.permute.xlu1 %576 }
 0x127   :  { %v303_v5 = vsel %vm216_vm3, %v1077_v32, %v300_v2  ;;  %v328_v32 = vld [vmem:[#allocation8 + $0x48] sm:$0xff] }
 0x128   :  { %765 = vcosq.f32 %v303_v5  ;;  %v762_v8 = vpop.eup %761  ;;  %v537_v0 = vpop.permute.xlu0 %536 }
 0x129   :  { %767 = vsinq.f32 %v303_v5  ;;  %v764_v47 = vpop.eup %763  ;;  %v211_v11 = vxor.u32 2147483648, %v762_v8 }
 0x12a   :  { %v208_v10 = vxor.u32 2147483648, %v764_v47  ;;  %v582_v60 = vpop.permute.xlu1 %581 }
 0x12b   :  { %v212_v39 = vsel %vm210_vm5, %v211_v11, %v764_v47 }
 0x12c   :  { %v209_v14 = vsel %vm207_vm4, %v762_v8, %v208_v10  ;;  %v592_v10 = vpop.permute.xlu0 %591 }
 0x12d   :  { %v213_v18 = vsel %vm206_vm6, %v209_v14, %v212_v39 }
 0x12e   :  { %v214_v22 = vsel %vm203_vm11, nan, %v213_v18  ;;  %v587_v4 = vpop.permute.xlu1 %586 }
 0x132   :  { %v766_v13 = vpop.eup %765 }
 0x133   :  { %v768_v15 = vpop.eup %767  ;;  %v315_v16 = vxor.u32 2147483648, %v766_v13 }
 0x134   :  { %v312_v17 = vxor.u32 2147483648, %v768_v15 }
 0x135   :  { %v316_v19 = vsel %vm314_vm7, %v315_v16, %v768_v15 }
 0x136   :  { %v313_v20 = vsel %vm311_vm9, %v766_v13, %v312_v17  ;;  %v597_v13 = vpop.permute.xlu1 %596 }
 0x137   :  { %v317_v21 = vsel %vm310_vm10, %v313_v20, %v316_v19  ;;  %v602_v20 = vpop.permute.xlu0 %601 }
 0x138   :  { %v318_v23 = vsel %vm307_vm12, nan, %v317_v21 }
 0x139   :  { %v727_v25 = vpack.c.bf16 %v318_v23, %v214_v22 }
 0x13b   :  { %729 = vmatprep.subr.msk.bf16.mxu0 %vm728_vm14, %v727_v25  ;;  %733 = vmatprep.subr.msk.bf16.mxu1 %vm728_vm14, %v727_v25 }
 0x13c   :  { %732 = vmatpush3.bf16.msk.msra.mxu0 %vm728_vm14, %v727_v25  ;;  %734 = vmatpush3.bf16.msk.msra.mxu1 %vm728_vm14, %v727_v25 }
 0x13f   :  { %713 = vmatmul.mubr.msk.f32.vlgmr.msra.gmra.mrb[0].mxu0 %vm329_vm0, %v320_v29  ;;  %722 = vmatmul.mubr.msk.f32.vlgmr.msra.gmra.mrb[0].mxu1 %vm329_vm0, %v326_v30  ;;  %v607_v30 = vpop.permute.xlu1 %606 }
 0x140   :  { %715 = vmatprep.mubr.msk.f32.mxu0 %vm329_vm0, %v321_v31  ;;  %724 = vmatprep.mubr.msk.f32.mxu1 %vm329_vm0, %v327_v33 }
 0x143   :  { %716 = vmatmul.mubr.msk.f32.gmra.mrb[2].mxu0 %vm329_vm0, %v322_v24  ;;  %725 = vmatmul.mubr.msk.f32.gmra.mrb[2].mxu1 %vm329_vm0, %v328_v32 }
 0x144   :  { %718 = vmatprep.mubr.msk.f32.mxu0 %vm329_vm0, %v323_v34 }
 0x147   :  { %719 = vmatmul.mubr.msk.f32.gmra.mrb[4].mxu0 %vm329_vm0, %v324_v35  ;;  %vm629_vm0 = vcmask 64512  }
 0x212   :  { %v714_v49 = vpop.f32.mrb[0].mxu0  ;;  %v723_v27 = vpop.f32.mrb[0].mxu1 }
 0x213   :  { %v540_v28 = vsub.f32 %v714_v49, %v497_v37  ;;  %v430_v50 = vpop.f32.mrb[1].mxu0  ;;  %v460_v52 = vpop.f32.mrb[1].mxu1  ;;  %v546_v1 = vsub.f32 %v723_v27, %v527_v44 }
 0x214   :  { %v539_v45 = vsub.f32 %v430_v50, %v492_v36  ;;  %v545_v57 = vsub.f32 %v460_v52, %v522_v43  ;;  %v617_v43 = vpop.permute.xlu1 %616 }
 0x215   :  { %769 = vtanh.f32 %v540_v28 }
 0x216   :  { %v717_v51 = vpop.f32.mrb[2].mxu0  ;;  %v726_v53 = vpop.f32.mrb[2].mxu1  ;;  %771 = vtanh.f32 %v539_v45 }
 0x217   :  { %v542_v55 = vsub.f32 %v717_v51, %v507_v40  ;;  %v440_v56 = vpop.f32.mrb[3].mxu0  ;;  %v470_v58 = vpop.f32.mrb[3].mxu1  ;;  %v548_v8 = vsub.f32 %v726_v53, %v537_v0 }
 0x218   :  { %v541_v59 = vsub.f32 %v440_v56, %v502_v38  ;;  %v547_v5 = vsub.f32 %v470_v58, %v532_v54  ;;  %v612_v38 = vpop.permute.xlu0 %611  ;;  %v656_v56 = vstv %s1186_s5 }
 0x219   :  { %773 = vtanh.f32 %v542_v55 }
 0x21a   :  { %v720_v61 = vpop.f32.mrb[4].mxu0  ;;  %775 = vtanh.f32 %v541_v59 }
 0x21b   :  { %v544_v62 = vsub.f32 %v720_v61, %v517_v42  ;;  %v450_v63 = vpop.f32.mrb[5].mxu0 }
 0x21c   :  { %v543_v26 = vsub.f32 %v450_v63, %v512_v41 }
 0x21d   :  { %777 = vtanh.f32 %v544_v62 }
 0x21e   :  { %779 = vtanh.f32 %v543_v26 }
 0x21f   :  { %v770_v2 = vpop.eup %769  ;;  %781 = vtanh.f32 %v545_v57 }
 0x220   :  { %v620_v6 = vmul.f32 %v770_v2, %v577_v48  ;;  %v772_v7 = vpop.eup %771  ;;  %783 = vtanh.f32 %v546_v1 }
 0x221   :  { %v619_v3 = vmul.f32 %v772_v7, %v572_v46  ;;  %785 = vtanh.f32 %v547_v5 }
 0x222   :  { %v631_v47 = vsel %vm629_vm0, %v620_v6, 0.0  ;;  %787 = vtanh.f32 %v548_v8 }
 0x223   :  { %v774_v9 = vpop.eup %773  ;;  %v630_v11 = vsel %vm629_vm0, %v619_v3, 0.0 }
 0x224   :  { %v776_v12 = vpop.eup %775  ;;  %v632_v14 = vadd.f32 %v631_v47, %v630_v11  ;;  %v622_v39 = vmul.f32 %v774_v9, %v587_v4 }
 0x225   :  { %v621_v15 = vmul.f32 %v776_v12, %v582_v60 }
 0x226   :  { %v635_v23 = vsel %vm629_vm0, %v622_v39, 0.0 }
 0x227   :  { %v778_v16 = vpop.eup %777  ;;  %v633_v18 = vsel %vm629_vm0, %v621_v15, 0.0 }
 0x228   :  { %v780_v17 = vpop.eup %779  ;;  %v634_v21 = vadd.f32 %v633_v18, %v632_v14  ;;  %v624_v25 = vmul.f32 %v778_v16, %v597_v13 }
 0x229   :  { %v782_v19 = vpop.eup %781  ;;  %v623_v22 = vmul.f32 %v780_v17, %v592_v10 }
 0x22a   :  { %v784_v29 = vpop.eup %783  ;;  %v636_v31 = vadd.f32 %v635_v23, %v634_v21  ;;  %v625_v24 = vmul.f32 %v782_v19, %v602_v20  ;;  %v639_v36 = vsel %vm629_vm0, %v624_v25, 0.0 }
 0x22b   :  { %v637_v33 = vsel %vm629_vm0, %v623_v22, 0.0  ;;  %v786_v32 = vpop.eup %785  ;;  %v626_v35 = vmul.f32 %v784_v29, %v607_v30 }
 0x22c   :  { %v638_v34 = vadd.f32 %v637_v33, %v636_v31  ;;  %v788_v37 = vpop.eup %787  ;;  %v641_v41 = vsel %vm629_vm0, %v625_v24, 0.0  ;;  %v627_v42 = vmul.f32 %v786_v32, %v612_v38 }
 0x22d   :  { %v643_v46 = vsel %vm629_vm0, %v626_v35, 0.0  ;;  %v628_v48 = vmul.f32 %v788_v37, %v617_v43 }
 0x22e   :  { %v640_v40 = vadd.f32 %v639_v36, %v638_v34  ;;  %v645_v27 = vsel %vm629_vm0, %v627_v42, 0.0 }
 0x22f   :  { %v647_v50 = vsel %vm629_vm0, %v628_v48, 0.0 }
 0x230   :  { %v642_v44 = vadd.f32 %v641_v41, %v640_v40 }
 0x232   :  { %v644_v49 = vadd.f32 %v643_v46, %v642_v44 }
 0x234   :  { %v646_v28 = vadd.f32 %v645_v27, %v644_v49 }
 0x236   :  { %v648_v52 = vadd.f32 %v647_v50, %v646_v28 }
 0x238   :  { %v649_v45 = vrot.slane %v648_v52, 4 }
 0x23a   :  { %v650_v54 = vadd.f32 %v649_v45, %v648_v52 }
 0x23c   :  { %v651_v51 = vrot.slane %v650_v54, 2 }
 0x23e   :  { %v652_v53 = vadd.f32 %v651_v51, %v650_v54 }
 0x240   :  { %v653_v55 = vrot.slane %v652_v53, 1 }
 0x242   :  { %v654_v58 = vadd.f32 %v653_v55, %v652_v53 }
 0x244   :  { %v657_v59 = vsub.f32 %v654_v58, %v656_v56 }
 0x246   :  { %659 = vst.msk [vmem:[#allocation12] sm:$0x1] %vm658_vm15, %v657_v59 }
 0x247   :  { %910 = shalt.err (!%p907_p2)
}
 0x248   :  { %s911_s14 = scalar_lea.hbm %s1187_s6, 16 }
 0x249   :  { %p912_p3 = scmp.ne.s32.totalorder %s1187_s6, %s911_s14  ;;  %p915_p4 = scmp.lt.u32.totalorder %s911_s14, %s1187_s6 }
 0x24b   :  { %p917_p5 = pnand %p915_p4, %p912_p3 }
 0x24d   :  { %920 = shalt.err (!%p917_p5)
}
 0x24e   :  { %669 = dma.vmem_to_hbm [thread:$0]  %s667_s11, 16, %s1187_s6, [#allocation5]  }
 0x24f   :  { %927 = dma.done.wait [#allocation5], 16  }
 0x250   :  { %928 = vsyncadd [#allocation5], 4294967280 }
 0x251   :  { %673 = vsyncpa [#allocation4], 1 }
 0x252   :  { %674 = vsyncpa [#allocation7], 1 }
 0x253   :  { %675 = vsyncpa [#allocation10], 1 }
 0x254   :  { %676 = vsyncpa [#allocation5], 1 }

</bundles_post_ra>
